<compile_context>
chip_gen: v5e
topology: v5e:2x2
jax: 0.10.0
libtpu: 0.0.40
codegen_flags: <defaults>
</compile_context>

<pallas_src>
import functools

import jax
import jax.numpy as jnp
from jax.experimental import pallas as pl
from jax.experimental.pallas import tpu as pltpu  # noqa: F401  (TPU backend; kept for future bf16/prng work)


def _rnn_fused_kernel(cat_ref, x_ref, h0_ref,
                      wc_ref, wi_ref, wh_ref, b12_ref,   # fused W1|W2 split by concat piece
                      w3_ref, b3_ref,                    # row-permuted W3 (in, out) + bias
                      out_ref, hid_ref,
                      *, T, B, H, O):
    """Entire sequence in one kernel invocation (no grid); recurrence unrolled over T."""
    # --- preamble: everything not on the serial dependency chain -------------
    # Loop-invariant category projection + fused bias (one tiny matmul, once).
    base = (jnp.dot(cat_ref[...], wc_ref[...], preferred_element_type=jnp.float32)
            + b12_ref[...])                                            # (B, H+O)
    # Non-recurrent input projection for ALL timesteps in one MXU op.
    u_all = jnp.dot(x_ref[...], wi_ref[...],
                    preferred_element_type=jnp.float32)                # (T*B, H+O)

    wh = wh_ref[...]
    w3 = w3_ref[...]
    b3 = b3_ref[...]

    # --- serial recurrence (statically unrolled) ------------------------------
    h = h0_ref[...]                                                    # (B, H)
    for t in range(T):
        # Fused [hidden', out1] slab for step t.
        z = (u_all[t * B:(t + 1) * B, :]
             + base
             + jnp.dot(h, wh, preferred_element_type=jnp.float32))     # (B, H+O)

        # out2 = [out1, hidden'] @ W3^T + b3  ==  z @ W3r + b3 (rows pre-permuted).
        out2 = jnp.dot(z, w3, preferred_element_type=jnp.float32) + b3 # (B, O)

        # Dropout(p=0.1) is identity in eval mode; LogSoftmax over dim=1 (f32).
        m = jnp.max(out2, axis=1, keepdims=True)
        shifted = out2 - m
        lse = jnp.log(jnp.sum(jnp.exp(shifted), axis=1, keepdims=True))

        # Stage into the lane-dense (B, T*O) slab at a static column offset.
        out_ref[:, t * O:(t + 1) * O] = shifted - lse

        # New hidden state (first H columns of the fused slab) feeds step t+1.
        h = z[:, :H]

    hid_ref[...] = h


def prepare_params(params, n_categories, input_size):
    """One-time (hoisted) repacking of PyTorch-layout params into kernel layout."""
    C, I = n_categories, input_size
    H = params["w1"].shape[0]
    O = params["w2"].shape[0]

    # Fused (in, out) weight; columns ordered [hidden' (H), out1 (O)].
    w12 = jnp.concatenate([params["w1"].T, params["w2"].T], axis=1)   # (C+I+H, H+O)
    w3t = params["w3"].T                                              # (O+H, O)

    return {
        # Split along the concat axis so the kernel never slices a weight ref.
        "wc": w12[:C],                                                # (C, H+O)
        "wi": w12[C:C + I],                                           # (I, H+O)
        "wh": w12[C + I:],                                            # (H, H+O)
        "b12": jnp.concatenate([params["b1"], params["b2"]]).reshape(1, H + O),
        # Permute W3 rows from [out1, hidden'] -> [hidden', out1] to match z.
        "w3r": jnp.concatenate([w3t[O:], w3t[:O]], axis=0),           # (H+O, O)
        "b3": params["b3"].reshape(1, O),
    }


@jax.jit
def rnn_sequence_forward(category, inputs, hidden0, prepped):
    """Run all T timesteps inside ONE pallas_call (no grid, all operands resident).

    category: (B, C)  constant over the sequence
    inputs:   (T, B, I)
    hidden0:  (B, H)
    Returns (log_probs (T, B, O), final_hidden (B, H)).
    """
    T, B, I = inputs.shape
    H = hidden0.shape[1]
    O = prepped["b3"].shape[1]

    # Flatten time into rows so the non-recurrent projection is one matmul.
    x_all = inputs.reshape(T * B, I)

    kernel = functools.partial(_rnn_fused_kernel, T=T, B=B, H=H, O=O)

    out_slab, final_hidden = pl.pallas_call(
        kernel,
        out_shape=(
            jax.ShapeDtypeStruct((B, T * O), jnp.float32),  # lane-dense log-prob slab
            jax.ShapeDtypeStruct((B, H), jnp.float32),      # final hidden
        ),
    )(category, x_all, hidden0,
      prepped["wc"], prepped["wi"], prepped["wh"], prepped["b12"],
      prepped["w3r"], prepped["b3"])

    # (B, T*O) -> (T, B, O); layout plumbing in the wrapper, not the kernel.
    log_probs = out_slab.reshape(B, T, O).transpose(1, 0, 2)
    return log_probs, final_hidden


def init_params(key, n_categories, input_size, hidden_size, output_size):
    """Deterministic PyTorch-style uniform init for the three Linear layers."""
    k = jax.random.split(key, 6)
    in1 = n_categories + input_size + hidden_size
    in3 = hidden_size + output_size

    def u(kk, shape, fan_in):
        bound = 1.0 / jnp.sqrt(jnp.float32(fan_in))
        return jax.random.uniform(kk, shape, jnp.float32, -bound, bound)

    return {
        "w1": u(k[0], (hidden_size, in1), in1), "b1": u(k[1], (hidden_size,), in1),
        "w2": u(k[2], (output_size, in1), in1), "b2": u(k[3], (output_size,), in1),
        "w3": u(k[4], (output_size, in3), in3), "b3": u(k[5], (output_size,), in3),
    }


if __name__ == "__main__":
    # Small shapes consistent with the module (the original script's category
    # list was empty; we pick n_categories > 0 so the concat is non-trivial).
    B, C, I, H, O, T = 8, 4, 16, 32, 16, 8

    key = jax.random.PRNGKey(0)
    kc, ki, kp = jax.random.split(key, 3)
    category = jax.random.normal(kc, (B, C), jnp.float32)
    inputs = jax.random.normal(ki, (T, B, I), jnp.float32)
    hidden0 = jnp.zeros((B, H), jnp.float32)            # RNN.initialize_hidden()

    params = init_params(kp, C, I, H, O)
    prepped = prepare_params(params, C, I)              # hoisted out of the hot path

    log_probs, final_hidden = rnn_sequence_forward(category, inputs, hidden0, prepped)
    jax.block_until_ready((log_probs, final_hidden))

    # Pure-JAX step-by-step reference of the same math.
    hid = hidden0
    refs = []
    for t in range(T):
        combined = jnp.concatenate([category, inputs[t], hid], axis=1)
        h_new = combined @ params["w1"].T + params["b1"]
        o1 = combined @ params["w2"].T + params["b2"]
        o2 = jnp.concatenate([o1, h_new], axis=1) @ params["w3"].T + params["b3"]
        refs.append(jax.nn.log_softmax(o2, axis=1))
        hid = h_new
    ref_out = jnp.stack(refs, axis=0)

    assert jnp.allclose(log_probs, ref_out, atol=2e-4, rtol=2e-4), "log_probs mismatch"
    assert jnp.allclose(final_hidden, hid, atol=2e-4, rtol=2e-4), "hidden mismatch"

    print("KERNEL_OK")
</pallas_src>

<mosaic_0001>
module attributes {stable_mosaic.version = 11 : i64} {
  func.func @_rnn_fused_kernel(%arg0: memref<8x4xf32, #tpu.memory_space<vmem>>, %arg1: memref<64x16xf32, #tpu.memory_space<vmem>>, %arg2: memref<8x32xf32, #tpu.memory_space<vmem>>, %arg3: memref<4x48xf32, #tpu.memory_space<vmem>>, %arg4: memref<16x48xf32, #tpu.memory_space<vmem>>, %arg5: memref<32x48xf32, #tpu.memory_space<vmem>>, %arg6: memref<1x48xf32, #tpu.memory_space<vmem>>, %arg7: memref<48x16xf32, #tpu.memory_space<vmem>>, %arg8: memref<1x16xf32, #tpu.memory_space<vmem>>, %arg9: memref<8x128xf32, #tpu.memory_space<vmem>>, %arg10: memref<8x32xf32, #tpu.memory_space<vmem>>) attributes {dimension_semantics = [], scalar_prefetch = 0 : i64, scratch_operands = 0 : i64, tpu.core_type = #tpu.core_type<tc>} {
    %c0 = arith.constant 0 : index
    %c0_0 = arith.constant 0 : index
    %0 = vector.load %arg0[%c0, %c0_0] : memref<8x4xf32, #tpu.memory_space<vmem>>, vector<8x4xf32>
    %c0_1 = arith.constant 0 : index
    %c0_2 = arith.constant 0 : index
    %1 = vector.load %arg3[%c0_1, %c0_2] : memref<4x48xf32, #tpu.memory_space<vmem>>, vector<4x48xf32>
    %cst = arith.constant dense<0.000000e+00> : vector<8x48xf32>
    %2 = tpu.matmul %0, %1, %cst {dimension_numbers = #tpu.dot_dimension_numbers<[1], [0], [0], [1], [0, 0, 1, 1], [], []>} : vector<8x4xf32>, vector<4x48xf32>, vector<8x48xf32> -> vector<8x48xf32>
    %c0_3 = arith.constant 0 : index
    %c0_4 = arith.constant 0 : index
    %3 = vector.load %arg6[%c0_3, %c0_4] : memref<1x48xf32, #tpu.memory_space<vmem>>, vector<1x48xf32>
    %4 = vector.broadcast %3 : vector<1x48xf32> to vector<8x48xf32>
    %5 = arith.addf %2, %4 : vector<8x48xf32>
    %c0_5 = arith.constant 0 : index
    %c0_6 = arith.constant 0 : index
    %6 = vector.load %arg1[%c0_5, %c0_6] : memref<64x16xf32, #tpu.memory_space<vmem>>, vector<64x16xf32>
    %c0_7 = arith.constant 0 : index
    %c0_8 = arith.constant 0 : index
    %7 = vector.load %arg4[%c0_7, %c0_8] : memref<16x48xf32, #tpu.memory_space<vmem>>, vector<16x48xf32>
    %cst_9 = arith.constant dense<0.000000e+00> : vector<64x48xf32>
    %8 = tpu.matmul %6, %7, %cst_9 {dimension_numbers = #tpu.dot_dimension_numbers<[1], [0], [0], [1], [0, 0, 1, 1], [], []>} : vector<64x16xf32>, vector<16x48xf32>, vector<64x48xf32> -> vector<64x48xf32>
    %c0_10 = arith.constant 0 : index
    %c0_11 = arith.constant 0 : index
    %9 = vector.load %arg5[%c0_10, %c0_11] : memref<32x48xf32, #tpu.memory_space<vmem>>, vector<32x48xf32>
    %c0_12 = arith.constant 0 : index
    %c0_13 = arith.constant 0 : index
    %10 = vector.load %arg7[%c0_12, %c0_13] : memref<48x16xf32, #tpu.memory_space<vmem>>, vector<48x16xf32>
    %c0_14 = arith.constant 0 : index
    %c0_15 = arith.constant 0 : index
    %11 = vector.load %arg8[%c0_14, %c0_15] : memref<1x16xf32, #tpu.memory_space<vmem>>, vector<1x16xf32>
    %c0_16 = arith.constant 0 : index
    %c0_17 = arith.constant 0 : index
    %12 = vector.load %arg2[%c0_16, %c0_17] : memref<8x32xf32, #tpu.memory_space<vmem>>, vector<8x32xf32>
    %13 = vector.extract_strided_slice %8 {offsets = [0, 0], sizes = [8, 48], strides = [1, 1]} : vector<64x48xf32> to vector<8x48xf32>
    %14 = arith.addf %13, %5 : vector<8x48xf32>
    %cst_18 = arith.constant dense<0.000000e+00> : vector<8x48xf32>
    %15 = tpu.matmul %12, %9, %cst_18 {dimension_numbers = #tpu.dot_dimension_numbers<[1], [0], [0], [1], [0, 0, 1, 1], [], []>} : vector<8x32xf32>, vector<32x48xf32>, vector<8x48xf32> -> vector<8x48xf32>
    %16 = arith.addf %14, %15 : vector<8x48xf32>
    %cst_19 = arith.constant dense<0.000000e+00> : vector<8x16xf32>
    %17 = tpu.matmul %16, %10, %cst_19 {dimension_numbers = #tpu.dot_dimension_numbers<[1], [0], [0], [1], [0, 0, 1, 1], [], []>} : vector<8x48xf32>, vector<48x16xf32>, vector<8x16xf32> -> vector<8x16xf32>
    %18 = vector.broadcast %11 : vector<1x16xf32> to vector<8x16xf32>
    %19 = arith.addf %17, %18 : vector<8x16xf32>
    %cst_20 = arith.constant dense<0xFF800000> : vector<8xf32>
    %20 = vector.multi_reduction <maximumf>, %19, %cst_20 [1] : vector<8x16xf32> to vector<8xf32>
    %21 = vector.shape_cast %20 : vector<8xf32> to vector<8x1xf32>
    %22 = vector.broadcast %21 : vector<8x1xf32> to vector<8x16xf32>
    %23 = arith.subf %19, %22 : vector<8x16xf32>
    %24 = math.exp %23 : vector<8x16xf32>
    %cst_21 = arith.constant dense<0.000000e+00> : vector<8xf32>
    %25 = vector.multi_reduction <add>, %24, %cst_21 [1] : vector<8x16xf32> to vector<8xf32>
    %26 = vector.shape_cast %25 : vector<8xf32> to vector<8x1xf32>
    %27 = math.log %26 : vector<8x1xf32>
    %28 = vector.broadcast %27 : vector<8x1xf32> to vector<8x16xf32>
    %29 = arith.subf %23, %28 : vector<8x16xf32>
    %c0_22 = arith.constant 0 : index
    %c0_23 = arith.constant 0 : index
    %30 = vector.load %arg9[%c0_22, %c0_23] : memref<8x128xf32, #tpu.memory_space<vmem>>, vector<8x16xf32>
    tpu.vector_store %arg9[%c0_22, %c0_23], %29 {strides = array<i32>} : memref<8x128xf32, #tpu.memory_space<vmem>>, vector<8x16xf32>,
    %31 = vector.extract_strided_slice %16 {offsets = [0, 0], sizes = [8, 32], strides = [1, 1]} : vector<8x48xf32> to vector<8x32xf32>
    %32 = vector.extract_strided_slice %8 {offsets = [8, 0], sizes = [8, 48], strides = [1, 1]} : vector<64x48xf32> to vector<8x48xf32>
    %33 = arith.addf %32, %5 : vector<8x48xf32>
    %cst_24 = arith.constant dense<0.000000e+00> : vector<8x48xf32>
    %34 = tpu.matmul %31, %9, %cst_24 {dimension_numbers = #tpu.dot_dimension_numbers<[1], [0], [0], [1], [0, 0, 1, 1], [], []>} : vector<8x32xf32>, vector<32x48xf32>, vector<8x48xf32> -> vector<8x48xf32>
    %35 = arith.addf %33, %34 : vector<8x48xf32>
    %cst_25 = arith.constant dense<0.000000e+00> : vector<8x16xf32>
    %36 = tpu.matmul %35, %10, %cst_25 {dimension_numbers = #tpu.dot_dimension_numbers<[1], [0], [0], [1], [0, 0, 1, 1], [], []>} : vector<8x48xf32>, vector<48x16xf32>, vector<8x16xf32> -> vector<8x16xf32>
    %37 = vector.broadcast %11 : vector<1x16xf32> to vector<8x16xf32>
    %38 = arith.addf %36, %37 : vector<8x16xf32>
    %cst_26 = arith.constant dense<0xFF800000> : vector<8xf32>
    %39 = vector.multi_reduction <maximumf>, %38, %cst_26 [1] : vector<8x16xf32> to vector<8xf32>
    %40 = vector.shape_cast %39 : vector<8xf32> to vector<8x1xf32>
    %41 = vector.broadcast %40 : vector<8x1xf32> to vector<8x16xf32>
    %42 = arith.subf %38, %41 : vector<8x16xf32>
    %43 = math.exp %42 : vector<8x16xf32>
    %cst_27 = arith.constant dense<0.000000e+00> : vector<8xf32>
    %44 = vector.multi_reduction <add>, %43, %cst_27 [1] : vector<8x16xf32> to vector<8xf32>
    %45 = vector.shape_cast %44 : vector<8xf32> to vector<8x1xf32>
    %46 = math.log %45 : vector<8x1xf32>
    %47 = vector.broadcast %46 : vector<8x1xf32> to vector<8x16xf32>
    %48 = arith.subf %42, %47 : vector<8x16xf32>
    %c0_28 = arith.constant 0 : index
    %c16 = arith.constant 16 : index
    %49 = vector.load %arg9[%c0_28, %c16] : memref<8x128xf32, #tpu.memory_space<vmem>>, vector<8x16xf32>
    tpu.vector_store %arg9[%c0_28, %c16], %48 {strides = array<i32>} : memref<8x128xf32, #tpu.memory_space<vmem>>, vector<8x16xf32>,
    %50 = vector.extract_strided_slice %35 {offsets = [0, 0], sizes = [8, 32], strides = [1, 1]} : vector<8x48xf32> to vector<8x32xf32>
    %51 = vector.extract_strided_slice %8 {offsets = [16, 0], sizes = [8, 48], strides = [1, 1]} : vector<64x48xf32> to vector<8x48xf32>
    %52 = arith.addf %51, %5 : vector<8x48xf32>
    %cst_29 = arith.constant dense<0.000000e+00> : vector<8x48xf32>
    %53 = tpu.matmul %50, %9, %cst_29 {dimension_numbers = #tpu.dot_dimension_numbers<[1], [0], [0], [1], [0, 0, 1, 1], [], []>} : vector<8x32xf32>, vector<32x48xf32>, vector<8x48xf32> -> vector<8x48xf32>
    %54 = arith.addf %52, %53 : vector<8x48xf32>
    %cst_30 = arith.constant dense<0.000000e+00> : vector<8x16xf32>
    %55 = tpu.matmul %54, %10, %cst_30 {dimension_numbers = #tpu.dot_dimension_numbers<[1], [0], [0], [1], [0, 0, 1, 1], [], []>} : vector<8x48xf32>, vector<48x16xf32>, vector<8x16xf32> -> vector<8x16xf32>
    %56 = vector.broadcast %11 : vector<1x16xf32> to vector<8x16xf32>
    %57 = arith.addf %55, %56 : vector<8x16xf32>
    %cst_31 = arith.constant dense<0xFF800000> : vector<8xf32>
    %58 = vector.multi_reduction <maximumf>, %57, %cst_31 [1] : vector<8x16xf32> to vector<8xf32>
    %59 = vector.shape_cast %58 : vector<8xf32> to vector<8x1xf32>
    %60 = vector.broadcast %59 : vector<8x1xf32> to vector<8x16xf32>
    %61 = arith.subf %57, %60 : vector<8x16xf32>
    %62 = math.exp %61 : vector<8x16xf32>
    %cst_32 = arith.constant dense<0.000000e+00> : vector<8xf32>
    %63 = vector.multi_reduction <add>, %62, %cst_32 [1] : vector<8x16xf32> to vector<8xf32>
    %64 = vector.shape_cast %63 : vector<8xf32> to vector<8x1xf32>
    %65 = math.log %64 : vector<8x1xf32>
    %66 = vector.broadcast %65 : vector<8x1xf32> to vector<8x16xf32>
    %67 = arith.subf %61, %66 : vector<8x16xf32>
    %c0_33 = arith.constant 0 : index
    %c32 = arith.constant 32 : index
    %68 = vector.load %arg9[%c0_33, %c32] : memref<8x128xf32, #tpu.memory_space<vmem>>, vector<8x16xf32>
    tpu.vector_store %arg9[%c0_33, %c32], %67 {strides = array<i32>} : memref<8x128xf32, #tpu.memory_space<vmem>>, vector<8x16xf32>,
    %69 = vector.extract_strided_slice %54 {offsets = [0, 0], sizes = [8, 32], strides = [1, 1]} : vector<8x48xf32> to vector<8x32xf32>
    %70 = vector.extract_strided_slice %8 {offsets = [24, 0], sizes = [8, 48], strides = [1, 1]} : vector<64x48xf32> to vector<8x48xf32>
    %71 = arith.addf %70, %5 : vector<8x48xf32>
    %cst_34 = arith.constant dense<0.000000e+00> : vector<8x48xf32>
    %72 = tpu.matmul %69, %9, %cst_34 {dimension_numbers = #tpu.dot_dimension_numbers<[1], [0], [0], [1], [0, 0, 1, 1], [], []>} : vector<8x32xf32>, vector<32x48xf32>, vector<8x48xf32> -> vector<8x48xf32>
    %73 = arith.addf %71, %72 : vector<8x48xf32>
    %cst_35 = arith.constant dense<0.000000e+00> : vector<8x16xf32>
    %74 = tpu.matmul %73, %10, %cst_35 {dimension_numbers = #tpu.dot_dimension_numbers<[1], [0], [0], [1], [0, 0, 1, 1], [], []>} : vector<8x48xf32>, vector<48x16xf32>, vector<8x16xf32> -> vector<8x16xf32>
    %75 = vector.broadcast %11 : vector<1x16xf32> to vector<8x16xf32>
    %76 = arith.addf %74, %75 : vector<8x16xf32>
    %cst_36 = arith.constant dense<0xFF800000> : vector<8xf32>
    %77 = vector.multi_reduction <maximumf>, %76, %cst_36 [1] : vector<8x16xf32> to vector<8xf32>
    %78 = vector.shape_cast %77 : vector<8xf32> to vector<8x1xf32>
    %79 = vector.broadcast %78 : vector<8x1xf32> to vector<8x16xf32>
    %80 = arith.subf %76, %79 : vector<8x16xf32>
    %81 = math.exp %80 : vector<8x16xf32>
    %cst_37 = arith.constant dense<0.000000e+00> : vector<8xf32>
    %82 = vector.multi_reduction <add>, %81, %cst_37 [1] : vector<8x16xf32> to vector<8xf32>
    %83 = vector.shape_cast %82 : vector<8xf32> to vector<8x1xf32>
    %84 = math.log %83 : vector<8x1xf32>
    %85 = vector.broadcast %84 : vector<8x1xf32> to vector<8x16xf32>
    %86 = arith.subf %80, %85 : vector<8x16xf32>
    %c0_38 = arith.constant 0 : index
    %c48 = arith.constant 48 : index
    %87 = vector.load %arg9[%c0_38, %c48] : memref<8x128xf32, #tpu.memory_space<vmem>>, vector<8x16xf32>
    tpu.vector_store %arg9[%c0_38, %c48], %86 {strides = array<i32>} : memref<8x128xf32, #tpu.memory_space<vmem>>, vector<8x16xf32>,
    %88 = vector.extract_strided_slice %73 {offsets = [0, 0], sizes = [8, 32], strides = [1, 1]} : vector<8x48xf32> to vector<8x32xf32>
    %89 = vector.extract_strided_slice %8 {offsets = [32, 0], sizes = [8, 48], strides = [1, 1]} : vector<64x48xf32> to vector<8x48xf32>
    %90 = arith.addf %89, %5 : vector<8x48xf32>
    %cst_39 = arith.constant dense<0.000000e+00> : vector<8x48xf32>
    %91 = tpu.matmul %88, %9, %cst_39 {dimension_numbers = #tpu.dot_dimension_numbers<[1], [0], [0], [1], [0, 0, 1, 1], [], []>} : vector<8x32xf32>, vector<32x48xf32>, vector<8x48xf32> -> vector<8x48xf32>
    %92 = arith.addf %90, %91 : vector<8x48xf32>
    %cst_40 = arith.constant dense<0.000000e+00> : vector<8x16xf32>
    %93 = tpu.matmul %92, %10, %cst_40 {dimension_numbers = #tpu.dot_dimension_numbers<[1], [0], [0], [1], [0, 0, 1, 1], [], []>} : vector<8x48xf32>, vector<48x16xf32>, vector<8x16xf32> -> vector<8x16xf32>
    %94 = vector.broadcast %11 : vector<1x16xf32> to vector<8x16xf32>
    %95 = arith.addf %93, %94 : vector<8x16xf32>
    %cst_41 = arith.constant dense<0xFF800000> : vector<8xf32>
    %96 = vector.multi_reduction <maximumf>, %95, %cst_41 [1] : vector<8x16xf32> to vector<8xf32>
    %97 = vector.shape_cast %96 : vector<8xf32> to vector<8x1xf32>
    %98 = vector.broadcast %97 : vector<8x1xf32> to vector<8x16xf32>
    %99 = arith.subf %95, %98 : vector<8x16xf32>
    %100 = math.exp %99 : vector<8x16xf32>
    %cst_42 = arith.constant dense<0.000000e+00> : vector<8xf32>
    %101 = vector.multi_reduction <add>, %100, %cst_42 [1] : vector<8x16xf32> to vector<8xf32>
    %102 = vector.shape_cast %101 : vector<8xf32> to vector<8x1xf32>
    %103 = math.log %102 : vector<8x1xf32>
    %104 = vector.broadcast %103 : vector<8x1xf32> to vector<8x16xf32>
    %105 = arith.subf %99, %104 : vector<8x16xf32>
    %c0_43 = arith.constant 0 : index
    %c64 = arith.constant 64 : index
    %106 = vector.load %arg9[%c0_43, %c64] : memref<8x128xf32, #tpu.memory_space<vmem>>, vector<8x16xf32>
    tpu.vector_store %arg9[%c0_43, %c64], %105 {strides = array<i32>} : memref<8x128xf32, #tpu.memory_space<vmem>>, vector<8x16xf32>,
    %107 = vector.extract_strided_slice %92 {offsets = [0, 0], sizes = [8, 32], strides = [1, 1]} : vector<8x48xf32> to vector<8x32xf32>
    %108 = vector.extract_strided_slice %8 {offsets = [40, 0], sizes = [8, 48], strides = [1, 1]} : vector<64x48xf32> to vector<8x48xf32>
    %109 = arith.addf %108, %5 : vector<8x48xf32>
    %cst_44 = arith.constant dense<0.000000e+00> : vector<8x48xf32>
    %110 = tpu.matmul %107, %9, %cst_44 {dimension_numbers = #tpu.dot_dimension_numbers<[1], [0], [0], [1], [0, 0, 1, 1], [], []>} : vector<8x32xf32>, vector<32x48xf32>, vector<8x48xf32> -> vector<8x48xf32>
    %111 = arith.addf %109, %110 : vector<8x48xf32>
    %cst_45 = arith.constant dense<0.000000e+00> : vector<8x16xf32>
    %112 = tpu.matmul %111, %10, %cst_45 {dimension_numbers = #tpu.dot_dimension_numbers<[1], [0], [0], [1], [0, 0, 1, 1], [], []>} : vector<8x48xf32>, vector<48x16xf32>, vector<8x16xf32> -> vector<8x16xf32>
    %113 = vector.broadcast %11 : vector<1x16xf32> to vector<8x16xf32>
    %114 = arith.addf %112, %113 : vector<8x16xf32>
    %cst_46 = arith.constant dense<0xFF800000> : vector<8xf32>
    %115 = vector.multi_reduction <maximumf>, %114, %cst_46 [1] : vector<8x16xf32> to vector<8xf32>
    %116 = vector.shape_cast %115 : vector<8xf32> to vector<8x1xf32>
    %117 = vector.broadcast %116 : vector<8x1xf32> to vector<8x16xf32>
    %118 = arith.subf %114, %117 : vector<8x16xf32>
    %119 = math.exp %118 : vector<8x16xf32>
    %cst_47 = arith.constant dense<0.000000e+00> : vector<8xf32>
    %120 = vector.multi_reduction <add>, %119, %cst_47 [1] : vector<8x16xf32> to vector<8xf32>
    %121 = vector.shape_cast %120 : vector<8xf32> to vector<8x1xf32>
    %122 = math.log %121 : vector<8x1xf32>
    %123 = vector.broadcast %122 : vector<8x1xf32> to vector<8x16xf32>
    %124 = arith.subf %118, %123 : vector<8x16xf32>
    %c0_48 = arith.constant 0 : index
    %c80 = arith.constant 80 : index
    %125 = vector.load %arg9[%c0_48, %c80] : memref<8x128xf32, #tpu.memory_space<vmem>>, vector<8x16xf32>
    tpu.vector_store %arg9[%c0_48, %c80], %124 {strides = array<i32>} : memref<8x128xf32, #tpu.memory_space<vmem>>, vector<8x16xf32>,
    %126 = vector.extract_strided_slice %111 {offsets = [0, 0], sizes = [8, 32], strides = [1, 1]} : vector<8x48xf32> to vector<8x32xf32>
    %127 = vector.extract_strided_slice %8 {offsets = [48, 0], sizes = [8, 48], strides = [1, 1]} : vector<64x48xf32> to vector<8x48xf32>
    %128 = arith.addf %127, %5 : vector<8x48xf32>
    %cst_49 = arith.constant dense<0.000000e+00> : vector<8x48xf32>
    %129 = tpu.matmul %126, %9, %cst_49 {dimension_numbers = #tpu.dot_dimension_numbers<[1], [0], [0], [1], [0, 0, 1, 1], [], []>} : vector<8x32xf32>, vector<32x48xf32>, vector<8x48xf32> -> vector<8x48xf32>
    %130 = arith.addf %128, %129 : vector<8x48xf32>
    %cst_50 = arith.constant dense<0.000000e+00> : vector<8x16xf32>
    %131 = tpu.matmul %130, %10, %cst_50 {dimension_numbers = #tpu.dot_dimension_numbers<[1], [0], [0], [1], [0, 0, 1, 1], [], []>} : vector<8x48xf32>, vector<48x16xf32>, vector<8x16xf32> -> vector<8x16xf32>
    %132 = vector.broadcast %11 : vector<1x16xf32> to vector<8x16xf32>
    %133 = arith.addf %131, %132 : vector<8x16xf32>
    %cst_51 = arith.constant dense<0xFF800000> : vector<8xf32>
    %134 = vector.multi_reduction <maximumf>, %133, %cst_51 [1] : vector<8x16xf32> to vector<8xf32>
    %135 = vector.shape_cast %134 : vector<8xf32> to vector<8x1xf32>
    %136 = vector.broadcast %135 : vector<8x1xf32> to vector<8x16xf32>
    %137 = arith.subf %133, %136 : vector<8x16xf32>
    %138 = math.exp %137 : vector<8x16xf32>
    %cst_52 = arith.constant dense<0.000000e+00> : vector<8xf32>
    %139 = vector.multi_reduction <add>, %138, %cst_52 [1] : vector<8x16xf32> to vector<8xf32>
    %140 = vector.shape_cast %139 : vector<8xf32> to vector<8x1xf32>
    %141 = math.log %140 : vector<8x1xf32>
    %142 = vector.broadcast %141 : vector<8x1xf32> to vector<8x16xf32>
    %143 = arith.subf %137, %142 : vector<8x16xf32>
    %c0_53 = arith.constant 0 : index
    %c96 = arith.constant 96 : index
    %144 = vector.load %arg9[%c0_53, %c96] : memref<8x128xf32, #tpu.memory_space<vmem>>, vector<8x16xf32>
    tpu.vector_store %arg9[%c0_53, %c96], %143 {strides = array<i32>} : memref<8x128xf32, #tpu.memory_space<vmem>>, vector<8x16xf32>,
    %145 = vector.extract_strided_slice %130 {offsets = [0, 0], sizes = [8, 32], strides = [1, 1]} : vector<8x48xf32> to vector<8x32xf32>
    %146 = vector.extract_strided_slice %8 {offsets = [56, 0], sizes = [8, 48], strides = [1, 1]} : vector<64x48xf32> to vector<8x48xf32>
    %147 = arith.addf %146, %5 : vector<8x48xf32>
    %cst_54 = arith.constant dense<0.000000e+00> : vector<8x48xf32>
    %148 = tpu.matmul %145, %9, %cst_54 {dimension_numbers = #tpu.dot_dimension_numbers<[1], [0], [0], [1], [0, 0, 1, 1], [], []>} : vector<8x32xf32>, vector<32x48xf32>, vector<8x48xf32> -> vector<8x48xf32>
    %149 = arith.addf %147, %148 : vector<8x48xf32>
    %cst_55 = arith.constant dense<0.000000e+00> : vector<8x16xf32>
    %150 = tpu.matmul %149, %10, %cst_55 {dimension_numbers = #tpu.dot_dimension_numbers<[1], [0], [0], [1], [0, 0, 1, 1], [], []>} : vector<8x48xf32>, vector<48x16xf32>, vector<8x16xf32> -> vector<8x16xf32>
    %151 = vector.broadcast %11 : vector<1x16xf32> to vector<8x16xf32>
    %152 = arith.addf %150, %151 : vector<8x16xf32>
    %cst_56 = arith.constant dense<0xFF800000> : vector<8xf32>
    %153 = vector.multi_reduction <maximumf>, %152, %cst_56 [1] : vector<8x16xf32> to vector<8xf32>
    %154 = vector.shape_cast %153 : vector<8xf32> to vector<8x1xf32>
    %155 = vector.broadcast %154 : vector<8x1xf32> to vector<8x16xf32>
    %156 = arith.subf %152, %155 : vector<8x16xf32>
    %157 = math.exp %156 : vector<8x16xf32>
    %cst_57 = arith.constant dense<0.000000e+00> : vector<8xf32>
    %158 = vector.multi_reduction <add>, %157, %cst_57 [1] : vector<8x16xf32> to vector<8xf32>
    %159 = vector.shape_cast %158 : vector<8xf32> to vector<8x1xf32>
    %160 = math.log %159 : vector<8x1xf32>
    %161 = vector.broadcast %160 : vector<8x1xf32> to vector<8x16xf32>
    %162 = arith.subf %156, %161 : vector<8x16xf32>
    %c0_58 = arith.constant 0 : index
    %c112 = arith.constant 112 : index
    %163 = vector.load %arg9[%c0_58, %c112] : memref<8x128xf32, #tpu.memory_space<vmem>>, vector<8x16xf32>
    tpu.vector_store %arg9[%c0_58, %c112], %162 {strides = array<i32>} : memref<8x128xf32, #tpu.memory_space<vmem>>, vector<8x16xf32>,
    %164 = vector.extract_strided_slice %149 {offsets = [0, 0], sizes = [8, 32], strides = [1, 1]} : vector<8x48xf32> to vector<8x32xf32>
    %c0_59 = arith.constant 0 : index
    %c0_60 = arith.constant 0 : index
    %165 = vector.load %arg10[%c0_59, %c0_60] : memref<8x32xf32, #tpu.memory_space<vmem>>, vector<8x32xf32>
    tpu.vector_store %arg10[%c0_59, %c0_60], %164 {strides = array<i32>} : memref<8x32xf32, #tpu.memory_space<vmem>>, vector<8x32xf32>,
    return
  }
}

</mosaic_0001>

<bundles_post_ra>
// kernel: rnn_sequence_forward.1
= control target key start
LH: loop header
LB: loop body
LE: loop exit
PB: predicated region body
PF: predicated region fallthrough
CT: control target
= control target key end

     0   :  { %16 = vsyncpa [#allocation3], 0  ;;  %s1331_s0 = inlined_call_operand.vmem [shape: f32[8,4], index: 0, kind: input, shape index: {}]   ;;  %s1332_s1 = inlined_call_operand.vmem [shape: f32[64,16], index: 1, kind: input, shape index: {}]   ;;  %s1333_s2 = inlined_call_operand.hbm [shape: f32[8,32], index: 2, kind: input, shape index: {}]   ;;  %s1334_s3 = inlined_call_operand.hbm [shape: f32[4,48], index: 3, kind: input, shape index: {}]   ;;  %s1335_s4 = inlined_call_operand.hbm [shape: f32[16,48], index: 4, kind: input, shape index: {}]   ;;  %s1336_s5 = inlined_call_operand.hbm [shape: f32[32,48], index: 5, kind: input, shape index: {}]   ;;  %s1337_s6 = inlined_call_operand.vmem [shape: f32[1,48], index: 6, kind: input, shape index: {}]   ;;  %s1338_s7 = inlined_call_operand.vmem [shape: f32[48,16], index: 7, kind: input, shape index: {}]   ;;  %s1339_s8 = inlined_call_operand.hbm [shape: f32[1,16], index: 8, kind: input, shape index: {}]   ;;  %s1340_s9 = inlined_call_operand.vmem [shape: f32[8,128], index: 9, kind: output, shape index: {0}]   ;;  %s1341_s10 = inlined_call_operand.hbm [shape: f32[8,32], index: 10, kind: output, shape index: {1}]  }
   0x1   :  { %17 = vsyncpa [#allocation6], 0 }
   0x2   :  { %18 = vsyncpa [#allocation9], 0  ;;  %s40_s15 = sshll.u32 %s1334_s3, 4  ;;  %s41_s15 = int_to_ptr.hbm [resolvable:$true] %s40_s15 }
   0x3   :  { %19 = vsyncpa [#allocation4], 0  ;;  %s1001_s16 = smov [#allocation5]   ;;  %s63_s20 = sshll.u32 %s1336_s5, 4  ;;  %s64_s20 = int_to_ptr.hbm [resolvable:$true] %s63_s20 }
   0x4   :  { %s42_s17 = sshll.u32 %s1001_s16, 4  ;;  %s1002_s21 = smov [#allocation8]   ;;  %s43_s17 = int_to_ptr.vmem [resolvable:$true] %s42_s17 }
   0x5   :  { %45 = dma.hbm_to_vmem [thread:$0]  %s41_s15, 64, %s43_s17, [#allocation6]  }
   0x6   :  { %s65_s22 = sshll.u32 %s1002_s21, 4  ;;  %s29_s25 = sshll.u32 %s1333_s2, 4  ;;  %s66_s22 = int_to_ptr.vmem [resolvable:$true] %s65_s22  ;;  %s30_s25 = int_to_ptr.hbm [resolvable:$true] %s29_s25 }
   0x7   :  { %s1003_s3 = smov 128   ;;  %s1004_s26 = smov 8  }
   0x8   :  { %71 = dma.hbm_to_vmem [thread:$0]  %s64_s20, 512, %s66_s22, [#allocation9], %s1003_s3, %s1003_s3, %s1004_s26  }
   0x9   :  { %s50_s29 = sshll.u32 %s1335_s4, 4  ;;  %s1005_s30 = smov [#allocation2]   ;;  %s51_s29 = int_to_ptr.hbm [resolvable:$true] %s50_s29 }
   0xa   :  { %s31_s11 = sshll.u32 %s1005_s30, 4  ;;  %s1006_s5 = smov [#allocation7]   ;;  %s32_s11 = int_to_ptr.vmem [resolvable:$true] %s31_s11 }
   0xb   :  { %34 = dma.hbm_to_vmem [thread:$0]  %s30_s25, 128, %s32_s11, [#allocation3]  }
   0xc   :  { %s52_s12 = sshll.u32 %s1006_s5, 4  ;;  %s81_s2 = sshll.u32 %s1339_s8, 4  ;;  %s53_s12 = int_to_ptr.vmem [resolvable:$true] %s52_s12  ;;  %s82_s2 = int_to_ptr.hbm [resolvable:$true] %s81_s2 }
   0xd   :  { %58 = dma.hbm_to_vmem [thread:$0]  %s51_s29, 256, %s53_s12, [#allocation6], %s1003_s3, %s1003_s3, %s1004_s26  }
   0xe   :  { %s1007_s15 = smov [#allocation10]  }
   0xf   :  { %s83_s16 = sshll.u32 %s1007_s15, 4  ;;  %s84_s16 = int_to_ptr.vmem [resolvable:$true] %s83_s16 }
  0x10   :  { %86 = dma.hbm_to_vmem [thread:$0]  %s82_s2, 16, %s84_s16, [#allocation9]  }
  0x11   :  { %993 = dma.done.wait [#allocation3], 128  }
  0x12   :  { %994 = vsyncadd [#allocation3], 4294967168 }
  0x13   :  { %995 = dma.done.wait [#allocation6], 320  }
  0x14   :  { %996 = vsyncadd [#allocation6], 4294966976 }
  0x15   :  { %997 = dma.done.wait [#allocation9], 528  }
  0x16   :  { %998 = vsyncadd [#allocation9], 4294966768  ;;  %v150_v0 = vld [vmem:[#allocation7 + $0x8] sm:$0xff]  ;;  %v149_v2 = vld [vmem:[#allocation7] sm:$0xff]  ;;  %vm151_vm0 = vcmask 130048   ;;  %vm117_vm1 = vcmask 1043456  }
  0x17   :  { %v1086_v1 = vld [vmem:[#allocation8 + $0x18] sm:$0xff]  ;;  %190 = vmatpush.msra.mxu1 %v150_v0  ;;  %v1089_v3 = vld [vmem:[#allocation8 + $0x10] sm:$0xff]  ;;  %v141_v4 = vld [vmem:[%s1332_s1] sm:$0xff]  ;;  %vm113_vm2 = vcmask 31744   ;;  %vm230_vm3 = vcmask 261120   ;;  %vm258_vm4 = vcmask 392192  }
  0x18   :  { %246 = vmatpush.msra.mxu2 %v1086_v1  ;;  %v1094_v5 = vld [vmem:[#allocation8 + $0x8] sm:$0xff]  ;;  %v1101_v8 = vld [vmem:[#allocation8] sm:$0xff]  ;;  %v143_v11 = vld [vmem:[%s1332_s1 + $0x10] sm:$0xff]  ;;  %vm358_vm5 = vcmask 261248   ;;  %s1009_s22 = smov 32   ;;  %s1010_s23 = smov 64  }
  0x19   :  { %v108_v6 = vld [vmem:[#allocation5] sm:$0xf]  ;;  %191 = vmatpush.msra.mxu1 %v149_v2  ;;  %v107_v7 = vld [vmem:[%s1331_s0] sm:$0xff]  ;;  %v144_v12 = vld [vmem:[%s1332_s1 + $0x18] sm:$0xff]  ;;  %s1008_s0 = smov 16   ;;  %s1011_s24 = smov 48  }
  0x1a   :  { %247 = vmatpush.msra.mxu2 %v1089_v3  ;;  %776 = vmatmul.msk.f32.vlgmr.msra.gmra.mxu1 %vm151_vm0, %v141_v4  ;;  %v228_v9 = vld [vmem:[#allocation2] sm:$0xff]  ;;  %v142_v10 = vld [vmem:[%s1332_s1 + $0x8] sm:$0xff]  ;;  %v147_v15 = vld [vmem:[%s1332_s1 + $0x30] sm:$0xff]  ;;  %s1012_s25 = smov 96   ;;  %vm423_vm6 = vcmask 392448   ;;  %vm488_vm7 = vcmask 523648  }
  0x1b   :  { %774 = vmatpush.msk.msra.mxu0 %vm117_vm1, %v108_v6  ;;  %v145_v13 = vld [vmem:[%s1332_s1 + $0x20] sm:$0xff]  ;;  %v146_v14 = vld [vmem:[%s1332_s1 + $0x28] sm:$0xff]  ;;  %v148_v16 = vld [vmem:[%s1332_s1 + $0x38] sm:$0xff]  ;;  %vm553_vm8 = vcmask 654848   ;;  %s1013_s11 = smov 80   ;;  %s1014_s5 = smov [#allocation11]  }
  0x1c   :  { %248 = vmatpush.msra.mxu2 %v1094_v5  ;;  %775 = vmatmul.msk.f32.vlgmr.msra.gmra.mxu0 %vm113_vm2, %v107_v7  ;;  %v1145_v17 = vld [vmem:[%s1338_s7 + $0x28] sm:$0xff]  ;;  %v1150_v18 = vld [vmem:[%s1338_s7 + $0x20] sm:$0xff]  ;;  %v1157_v19 = vld [vmem:[%s1338_s7 + $0x18] sm:$0xff]  ;;  %s758_s12 = sshll.u32 %s1014_s5, 4  ;;  %s760_s2 = sshll.u32 %s1341_s10, 4  ;;  %vm618_vm9 = vcmask 786048   ;;  %s759_s12 = int_to_ptr.vmem [resolvable:$true] %s758_s12  ;;  %s761_s2 = int_to_ptr.hbm [resolvable:$true] %s760_s2 }
  0x1d   :  { %310 = vmatpush.msrb.mxu0 %v1086_v1  ;;  %272 = vmatpush.msra.mxu3 %v1145_v17  ;;  %v1166_v20 = vld [vmem:[%s1338_s7 + $0x10] sm:$0xff]  ;;  %v1173_v21 = vld [vmem:[%s1338_s7 + $0x8] sm:$0xff]  ;;  %v1180_v22 = vld [vmem:[%s1338_s7] sm:$0xff]  ;;  %vm683_vm10 = vcmask 917248   ;;  %s1015_s10 = smov 112   ;;  %vm748_vm11 = vcmask 1048448  }
  0x1e   :  { %249 = vmatpush.msra.mxu2 %v1101_v8  ;;  %v815_v23 = vld [vmem:[%s1337_s6] ss:$0 sm:$0xff]  ;;  %v1215_v34 = vld [vmem:[#allocation10] ss:$0 sm:$0xff] }
  0x1f   :  { %784 = vmatmul.msk.f32.vlgmr.msra.gmra.mxu2 %vm230_vm3, %v228_v9  ;;  %311 = vmatpush.msrb.mxu0 %v1089_v3 }
  0x20   :  { %332 = vmatpush.msrb.mxu2 %v1145_v17  ;;  %273 = vmatpush.msra.mxu3 %v1150_v18 }
  0x21   :  { %312 = vmatpush.msrb.mxu0 %v1094_v5 }
  0x22   :  { %777 = vmatmul.msk.f32.gmra.mxu1 %vm151_vm0, %v142_v10  ;;  %333 = vmatpush.msrb.mxu2 %v1150_v18 }
  0x23   :  { %313 = vmatpush.msrb.mxu0 %v1101_v8  ;;  %274 = vmatpush.msra.mxu3 %v1157_v19 }
  0x24   :  { %334 = vmatpush.msrb.mxu2 %v1157_v19 }
  0x25   :  { %375 = vmatpush.msra.mxu0 %v1086_v1  ;;  %275 = vmatpush.msra.mxu3 %v1166_v20 }
  0x26   :  { %335 = vmatpush.msrb.mxu2 %v1166_v20 }
  0x27   :  { %376 = vmatpush.msra.mxu0 %v1089_v3  ;;  %276 = vmatpush.msra.mxu3 %v1173_v21 }
  0x28   :  { %336 = vmatpush.msrb.mxu2 %v1173_v21 }
  0x29   :  { %377 = vmatpush.msra.mxu0 %v1094_v5  ;;  %277 = vmatpush.msra.mxu3 %v1180_v22 }
  0x2a   :  { %778 = vmatmul.msk.f32.gmra.mxu1 %vm151_vm0, %v143_v11  ;;  %337 = vmatpush.msrb.mxu2 %v1180_v22 }
  0x2b   :  { %378 = vmatpush.msra.mxu0 %v1101_v8  ;;  %397 = vmatpush.msrb.mxu3 %v1145_v17 }
  0x2c   :  { %462 = vmatpush.msra.mxu2 %v1145_v17 }
  0x2d   :  { %398 = vmatpush.msrb.mxu3 %v1150_v18 }
  0x2e   :  { %463 = vmatpush.msra.mxu2 %v1150_v18 }
  0x2f   :  { %399 = vmatpush.msrb.mxu3 %v1157_v19 }
  0x30   :  { %464 = vmatpush.msra.mxu2 %v1157_v19 }
  0x31   :  { %400 = vmatpush.msrb.mxu3 %v1166_v20 }
  0x32   :  { %779 = vmatmul.msk.f32.gmra.mxu1 %vm151_vm0, %v144_v12  ;;  %465 = vmatpush.msra.mxu2 %v1166_v20 }
  0x33   :  { %401 = vmatpush.msrb.mxu3 %v1173_v21 }
  0x34   :  { %466 = vmatpush.msra.mxu2 %v1173_v21 }
  0x35   :  { %402 = vmatpush.msrb.mxu3 %v1180_v22 }
  0x36   :  { %467 = vmatpush.msra.mxu2 %v1180_v22 }
  0x3a   :  { %780 = vmatmul.msk.f32.gmra.mxu1 %vm151_vm0, %v145_v13 }
  0x42   :  { %781 = vmatmul.msk.f32.gmra.mxu1 %vm151_vm0, %v146_v14 }
  0x4a   :  { %782 = vmatmul.msk.f32.gmra.mxu1 %vm151_vm0, %v147_v15 }
  0x52   :  { %783 = vmatmul.msk.f32.gmra.mxu1 %vm151_vm0, %v148_v16 }
  0x97   :  { %v193_v26 = vpop.f32.mrf.mxu1 }
  0x99   :  { %v138_v24 = vpop.f32.mrf.mxu0 }
  0x9a   :  { %v1199_v25 = vadd.f32 %v815_v23, %v138_v24 }
  0x9c   :  { %v229_v27 = vadd.f32 %v193_v26, %v1199_v25 }
  0x9f   :  { %v196_v30 = vpop.f32.mrf.mxu1 }
  0xa0   :  { %v295_v31 = vadd.f32 %v196_v30, %v1199_v25 }
  0xa2   :  { %v251_v28 = vpop.f32.mrf.mxu2 }
  0xa3   :  { %v254_v29 = vadd.f32 %v251_v28, %v229_v27 }
  0xa5   :  { %785 = vmatmul.msk.f32.vlgmr.msra.gmra.mxu3 %vm258_vm4, %v254_v29  ;;  %786 = vmatmul.msk.f32.vlgmr.msrb.gmra.mxu0 %vm230_vm3, %v254_v29 }
  0xa6   :  { %440 = vmatpush.msrb.mxu0 %v1086_v1  ;;  %505 = vmatpush.msra.mxu3 %v1086_v1 }
  0xa7   :  { %v199_v38 = vpop.f32.mrf.mxu1 }
  0xa8   :  { %441 = vmatpush.msrb.mxu0 %v1089_v3  ;;  %506 = vmatpush.msra.mxu3 %v1089_v3  ;;  %v360_v41 = vadd.f32 %v199_v38, %v1199_v25 }
  0xaa   :  { %442 = vmatpush.msrb.mxu0 %v1094_v5  ;;  %507 = vmatpush.msra.mxu3 %v1094_v5 }
  0xac   :  { %443 = vmatpush.msrb.mxu0 %v1101_v8  ;;  %508 = vmatpush.msra.mxu3 %v1101_v8 }
  0xaf   :  { %v202_v50 = vpop.f32.mrf.mxu1 }
  0xb0   :  { %v425_v54 = vadd.f32 %v202_v50, %v1199_v25 }
 0x122   :  { %v315_v32 = vpop.f32.mrf.mxu0 }
 0x123   :  { %v318_v33 = vadd.f32 %v315_v32, %v295_v31 }
 0x125   :  { %787 = vmatmul.msk.f32.vlgmr.msrb.gmra.mxu2 %vm258_vm4, %v318_v33  ;;  %788 = vmatmul.msk.f32.vlgmr.msra.gmra.mxu0 %vm230_vm3, %v318_v33 }
 0x126   :  { %527 = vmatpush.msra.mxu0 %v1145_v17  ;;  %570 = vmatpush.msrb.mxu2 %v1086_v1 }
 0x128   :  { %v279_v35 = vpop.f32.mrf.mxu3  ;;  %528 = vmatpush.msra.mxu0 %v1150_v18  ;;  %571 = vmatpush.msrb.mxu2 %v1089_v3 }
 0x129   :  { %v280_v36 = vadd.f32 %v1215_v34, %v279_v35 }
 0x12a   :  { %529 = vmatpush.msra.mxu0 %v1157_v19  ;;  %572 = vmatpush.msrb.mxu2 %v1094_v5 }
 0x12b   :  { %v282_v37 = vsel %vm151_vm0, %v280_v36, -inf }
 0x12c   :  { %283 = vmax.xlane.f32.xlu0 %v282_v37  ;;  %530 = vmatpush.msra.mxu0 %v1166_v20 }
 0x12d   :  { %573 = vmatpush.msrb.mxu2 %v1101_v8 }
 0x12e   :  { %531 = vmatpush.msra.mxu0 %v1173_v21 }
 0x130   :  { %532 = vmatpush.msra.mxu0 %v1180_v22 }
 0x19f   :  { %v284_v39 = vpop.xlane.xlu0 %283 }
 0x1a0   :  { %v285_v40 = vsub.f32 %v280_v36, %v284_v39 }
 0x1a2   :  { %v286_v42 = vmul.f32 1.442695, %v285_v40  ;;  %v380_v43 = vpop.f32.mrf.mxu0 }
 0x1a3   :  { %v383_v44 = vadd.f32 %v380_v43, %v360_v41 }
 0x1a4   :  { %817 = vpow2.f32 %v286_v42 }
 0x1a5   :  { %789 = vmatmul.msk.f32.vlgmr.msrb.gmra.mxu3 %vm258_vm4, %v383_v44  ;;  %790 = vmatmul.msk.f32.vlgmr.msrb.gmra.mxu0 %vm230_vm3, %v383_v44 }
 0x1a6   :  { %592 = vmatpush.msrb.mxu3 %v1145_v17  ;;  %635 = vmatpush.msrb.mxu0 %v1086_v1 }
 0x1a8   :  { %v339_v45 = vpop.f32.mrf.mxu2  ;;  %593 = vmatpush.msrb.mxu3 %v1150_v18  ;;  %636 = vmatpush.msrb.mxu0 %v1089_v3 }
 0x1a9   :  { %v340_v46 = vadd.f32 %v1215_v34, %v339_v45 }
 0x1aa   :  { %v818_v47 = vpop.eup %817  ;;  %594 = vmatpush.msrb.mxu3 %v1157_v19  ;;  %637 = vmatpush.msrb.mxu0 %v1094_v5 }
 0x1ab   :  { %v342_v48 = vsel %vm151_vm0, %v340_v46, -inf  ;;  %v288_v49 = vsel %vm151_vm0, %v818_v47, 0.0 }
 0x1ac   :  { %343 = vmax.xlane.f32.xlu1 %v342_v48  ;;  %289 = vadd.xlane.f32.xlu0 %v288_v49 }
 0x1ad   :  { %595 = vmatpush.msrb.mxu3 %v1166_v20  ;;  %638 = vmatpush.msrb.mxu0 %v1101_v8 }
 0x1af   :  { %596 = vmatpush.msrb.mxu3 %v1173_v21 }
 0x1b1   :  { %597 = vmatpush.msrb.mxu3 %v1180_v22 }
 0x21f   :  { %v344_v51 = vpop.xlane.xlu1 %343  ;;  %v290_v52 = vpop.xlane.xlu0 %289 }
 0x220   :  { %v345_v53 = vsub.f32 %v340_v46, %v344_v51  ;;  %819 = vlog2.f32 %v290_v52 }
 0x222   :  { %v346_v55 = vmul.f32 1.442695, %v345_v53  ;;  %v445_v56 = vpop.f32.mrf.mxu0 }
 0x223   :  { %v448_v57 = vadd.f32 %v445_v56, %v425_v54 }
 0x224   :  { %821 = vpow2.f32 %v346_v55 }
 0x225   :  { %791 = vmatmul.msk.f32.vlgmr.msra.gmra.mxu2 %vm258_vm4, %v448_v57  ;;  %792 = vmatmul.msk.f32.vlgmr.msra.gmra.mxu3 %vm230_vm3, %v448_v57 }
 0x226   :  { %v820_v58 = vpop.eup %819  ;;  %657 = vmatpush.msra.mxu2 %v1145_v17  ;;  %700 = vmatpush.msra.mxu3 %v1086_v1 }
 0x227   :  { %v292_v59 = vmul.f32 0.6931472, %v820_v58 }
 0x228   :  { %v404_v60 = vpop.f32.mrf.mxu3  ;;  %658 = vmatpush.msra.mxu2 %v1150_v18  ;;  %701 = vmatpush.msra.mxu3 %v1089_v3  ;;  %v205_v3 = vpop.f32.mrf.mxu1 }
 0x229   :  { %v293_v61 = vsub.f32 %v285_v40, %v292_v59  ;;  %v1253_v62 = vadd.f32 %v1215_v34, %v404_v60 }
 0x22a   :  { %v822_v63 = vpop.eup %821  ;;  %659 = vmatpush.msra.mxu2 %v1157_v19  ;;  %702 = vmatpush.msra.mxu3 %v1094_v5  ;;  %v490_v5 = vadd.f32 %v205_v3, %v1199_v25 }
 0x22b   :  { %294 = vst.msk [vmem:[%s1340_s9] sm:$0xff] %vm151_vm0, %v293_v61  ;;  %v348_v0 = vsel %vm151_vm0, %v822_v63, 0.0  ;;  %v407_v1 = vsel %vm151_vm0, %v1253_v62, -inf }
 0x22c   :  { %349 = vadd.xlane.f32.xlu1 %v348_v0  ;;  %408 = vmax.xlane.f32.xlu2 %v407_v1 }
 0x22d   :  { %660 = vmatpush.msra.mxu2 %v1166_v20  ;;  %703 = vmatpush.msra.mxu3 %v1101_v8 }
 0x22f   :  { %661 = vmatpush.msra.mxu2 %v1173_v21 }
 0x231   :  { %662 = vmatpush.msra.mxu2 %v1180_v22 }
 0x29f   :  { %v350_v2 = vpop.xlane.xlu1 %349  ;;  %v409_v13 = vpop.xlane.xlu2 %408 }
 0x2a0   :  { %823 = vlog2.f32 %v350_v2  ;;  %v410_v33 = vsub.f32 %v1253_v62, %v409_v13 }
 0x2a2   :  { %v411_v37 = vmul.f32 1.442695, %v410_v33 }
 0x2a6   :  { %v824_v4 = vpop.eup %823 }
 0x2a7   :  { %v352_v6 = vmul.f32 0.6931472, %v824_v4 }
 0x2a8   :  { %v469_v7 = vpop.f32.mrf.mxu2  ;;  %v510_v9 = vpop.f32.mrf.mxu3 }
 0x2a9   :  { %v470_v10 = vadd.f32 %v1215_v34, %v469_v7  ;;  %v513_v11 = vadd.f32 %v510_v9, %v490_v5  ;;  %v353_v12 = vsub.f32 %v345_v53, %v352_v6 }
 0x2ab   :  { %793 = vmatmul.msk.f32.vlgmr.msra.gmra.mxu0 %vm258_vm4, %v513_v11  ;;  %794 = vmatmul.msk.f32.vlgmr.msrb.gmra.mxu2 %vm230_vm3, %v513_v11  ;;  %v472_v8 = vsel %vm151_vm0, %v470_v10, -inf }
 0x2ac   :  { %355 = vrot.lane.b32.xlu2 %v353_v12, %s1008_s0  ;;  %473 = vmax.xlane.f32.xlu0 %v472_v8 }
 0x2ad   :  { %722 = vmatpush.msra.mxu0 %v1145_v17  ;;  %v208_v17 = vpop.f32.mrf.mxu1 }
 0x2af   :  { %723 = vmatpush.msra.mxu0 %v1150_v18 }
 0x2b1   :  { %724 = vmatpush.msra.mxu0 %v1157_v19  ;;  %v555_v19 = vadd.f32 %v208_v17, %v1199_v25 }
 0x2b3   :  { %725 = vmatpush.msra.mxu0 %v1166_v20 }
 0x2b5   :  { %726 = vmatpush.msra.mxu0 %v1173_v21 }
 0x2b7   :  { %727 = vmatpush.msra.mxu0 %v1180_v22  ;;  %v211_v22 = vpop.f32.mrf.mxu1 }
 0x2b8   :  { %v620_v23 = vadd.f32 %v211_v22, %v1199_v25 }
 0x2bf   :  { %v214_v36 = vpop.f32.mrf.mxu1 }
 0x2c0   :  { %v685_v38 = vadd.f32 %v214_v36, %v1199_v25 }
 0x306   :  { %v356_v14 = vpop.permute.xlu2 %355 }
 0x307   :  { %359 = vst.msk [vmem:[%s1340_s9] sm:$0xff] %vm358_vm5, %v356_v14 }
 0x31f   :  { %v474_v30 = vpop.xlane.xlu0 %473 }
 0x320   :  { %v475_v44 = vsub.f32 %v470_v10, %v474_v30 }
 0x322   :  { %v476_v47 = vmul.f32 1.442695, %v475_v44 }
 0x328   :  { %v534_v15 = vpop.f32.mrf.mxu0 }
 0x329   :  { %v535_v16 = vadd.f32 %v1215_v34, %v534_v15 }
 0x32b   :  { %v537_v18 = vsel %vm151_vm0, %v535_v16, -inf }
 0x32c   :  { %538 = vmax.xlane.f32.xlu1 %v537_v18 }
 0x32e   :  { %v575_v20 = vpop.f32.mrf.mxu2 }
 0x32f   :  { %v578_v21 = vadd.f32 %v575_v20, %v555_v19 }
 0x331   :  { %795 = vmatmul.msk.f32.vlgmr.msrb.gmra.mxu3 %vm258_vm4, %v578_v21  ;;  %796 = vmatmul.msk.f32.vlgmr.msrb.gmra.mxu0 %vm230_vm3, %v578_v21 }
 0x39f   :  { %v539_v25 = vpop.xlane.xlu1 %538 }
 0x3a0   :  { %v540_v49 = vsub.f32 %v535_v16, %v539_v25 }
 0x3a2   :  { %v541_v51 = vmul.f32 1.442695, %v540_v49 }
 0x3ae   :  { %v640_v24 = vpop.f32.mrf.mxu0 }
 0x3af   :  { %v643_v26 = vadd.f32 %v640_v24, %v620_v23 }
 0x3b1   :  { %797 = vmatmul.msk.f32.vlgmr.msra.gmra.mxu2 %vm258_vm4, %v643_v26  ;;  %798 = vmatmul.msk.f32.vlgmr.msra.gmra.mxu3 %vm230_vm3, %v643_v26 }
 0x3b4   :  { %v599_v27 = vpop.f32.mrf.mxu3 }
 0x3b5   :  { %v600_v28 = vadd.f32 %v1215_v34, %v599_v27 }
 0x3b7   :  { %v602_v29 = vsel %vm151_vm0, %v600_v28, -inf }
 0x3b8   :  { %603 = vmax.xlane.f32.xlu0 %v602_v29 }
 0x42b   :  { %v604_v31 = vpop.xlane.xlu0 %603 }
 0x42c   :  { %v1292_v32 = vsub.f32 %v600_v28, %v604_v31 }
 0x42e   :  { %v606_v35 = vmul.f32 1.442695, %v1292_v32 }
 0x430   :  { %825 = vpow2.f32 %v606_v35 }
 0x431   :  { %827 = vpow2.f32 %v411_v37 }
 0x432   :  { %829 = vpow2.f32 %v476_v47 }
 0x433   :  { %831 = vpow2.f32 %v541_v51 }
 0x434   :  { %v664_v39 = vpop.f32.mrf.mxu2  ;;  %v705_v40 = vpop.f32.mrf.mxu3 }
 0x435   :  { %v665_v41 = vadd.f32 %v1215_v34, %v664_v39  ;;  %v708_v42 = vadd.f32 %v705_v40, %v685_v38 }
 0x436   :  { %v826_v43 = vpop.eup %825 }
 0x437   :  { %750 = vst.msk [vmem:[#allocation11] sm:$0xff] %vm230_vm3, %v708_v42  ;;  %799 = vmatmul.msk.f32.vlgmr.msra.gmra.mxu0 %vm258_vm4, %v708_v42  ;;  %v667_v45 = vsel %vm151_vm0, %v665_v41, -inf  ;;  %v608_v46 = vsel %vm151_vm0, %v826_v43, 0.0  ;;  %v828_v48 = vpop.eup %827 }
 0x438   :  { %668 = vmax.xlane.f32.xlu1 %v667_v45  ;;  %609 = vadd.xlane.f32.xlu2 %v608_v46  ;;  %v413_v50 = vsel %vm151_vm0, %v828_v48, 0.0  ;;  %v830_v52 = vpop.eup %829  ;;  %763 = dma.vmem_to_hbm [thread:$0]  %s759_s12, 128, %s761_s2, [#allocation4]  }
 0x439   :  { %v478_v53 = vsel %vm151_vm0, %v830_v52, 0.0  ;;  %v832_v54 = vpop.eup %831 }
 0x43a   :  { %v543_v55 = vsel %vm151_vm0, %v832_v54, 0.0 }
 0x440   :  { %414 = vadd.xlane.f32.xlu1 %v413_v50 }
 0x448   :  { %479 = vadd.xlane.f32.xlu1 %v478_v53 }
 0x450   :  { %544 = vadd.xlane.f32.xlu1 %v543_v55 }
 0x4ab   :  { %v669_v56 = vpop.xlane.xlu1 %668  ;;  %v610_v20 = vpop.xlane.xlu2 %609 }
 0x4ac   :  { %v670_v57 = vsub.f32 %v665_v41, %v669_v56 }
 0x4ae   :  { %v671_v58 = vmul.f32 1.442695, %v670_v57 }
 0x4b0   :  { %833 = vpow2.f32 %v671_v58 }
 0x4b3   :  { %v415_v59 = vpop.xlane.xlu1 %414 }
 0x4b4   :  { %v729_v60 = vpop.f32.mrf.mxu0  ;;  %835 = vlog2.f32 %v415_v59 }
 0x4b5   :  { %v730_v61 = vadd.f32 %v1215_v34, %v729_v60 }
 0x4b6   :  { %v834_v62 = vpop.eup %833 }
 0x4b7   :  { %v732_v63 = vsel %vm151_vm0, %v730_v61, -inf  ;;  %v673_v0 = vsel %vm151_vm0, %v834_v62, 0.0 }
 0x4b8   :  { %733 = vmax.xlane.f32.xlu0 %v732_v63  ;;  %674 = vadd.xlane.f32.xlu1 %v673_v0 }
 0x4ba   :  { %v836_v2 = vpop.eup %835 }
 0x4bb   :  { %v480_v1 = vpop.xlane.xlu1 %479  ;;  %v417_v4 = vmul.f32 0.6931472, %v836_v2 }
 0x4bd   :  { %v418_v6 = vsub.f32 %v410_v33, %v417_v4 }
 0x4c3   :  { %v545_v3 = vpop.xlane.xlu1 %544 }
 0x4c4   :  { %837 = vlog2.f32 %v545_v3 }
 0x4c5   :  { %839 = vlog2.f32 %v480_v1 }
 0x4ca   :  { %v838_v5 = vpop.eup %837 }
 0x4cb   :  { %v840_v7 = vpop.eup %839  ;;  %v547_v9 = vmul.f32 0.6931472, %v838_v5 }
 0x4cc   :  { %420 = vrot.lane.b32.xlu0 %v418_v6, %s1009_s22  ;;  %v482_v34 = vmul.f32 0.6931472, %v840_v7 }
 0x4cd   :  { %v548_v10 = vsub.f32 %v540_v49, %v547_v9 }
 0x4ce   :  { %v483_v11 = vsub.f32 %v475_v44, %v482_v34 }
 0x4d1   :  { %550 = vrot.lane.b32.xlu1 %v548_v10, %s1010_s23 }
 0x4d4   :  { %485 = vrot.lane.b32.xlu0 %v483_v11, %s1011_s24 }
 0x52b   :  { %v675_v12 = vpop.xlane.xlu1 %674  ;;  %v734_v8 = vpop.xlane.xlu0 %733 }
 0x52c   :  { %841 = vlog2.f32 %v675_v12  ;;  %v735_v13 = vsub.f32 %v730_v61, %v734_v8 }
 0x52e   :  { %v736_v14 = vmul.f32 1.442695, %v735_v13 }
 0x530   :  { %843 = vpow2.f32 %v736_v14 }
 0x531   :  { %845 = vlog2.f32 %v610_v20 }
 0x532   :  { %v842_v15 = vpop.eup %841 }
 0x533   :  { %v677_v16 = vmul.f32 0.6931472, %v842_v15 }
 0x535   :  { %v678_v17 = vsub.f32 %v670_v57, %v677_v16 }
 0x536   :  { %v844_v18 = vpop.eup %843 }
 0x537   :  { %680 = vrot.lane.b32.xlu0 %v678_v17, %s1012_s25  ;;  %v738_v19 = vsel %vm151_vm0, %v844_v18, 0.0  ;;  %v846_v23 = vpop.eup %845 }
 0x538   :  { %739 = vadd.xlane.f32.xlu2 %v738_v19  ;;  %v612_v26 = vmul.f32 0.6931472, %v846_v23 }
 0x53a   :  { %v613_v27 = vsub.f32 %v1292_v32, %v612_v26 }
 0x53e   :  { %v421_v21 = vpop.permute.xlu0 %420 }
 0x53f   :  { %424 = vst.msk [vmem:[%s1340_s9] sm:$0xff] %vm423_vm6, %v421_v21 }
 0x543   :  { %v551_v24 = vpop.permute.xlu1 %550 }
 0x546   :  { %v486_v22 = vpop.permute.xlu0 %485 }
 0x547   :  { %489 = vst.msk [vmem:[%s1340_s9] sm:$0xff] %vm488_vm7, %v486_v22 }
 0x548   :  { %554 = vst.msk [vmem:[%s1340_s9] sm:$0xff] %vm553_vm8, %v551_v24 }
 0x550   :  { %615 = vrot.lane.b32.xlu2 %v613_v27, %s1013_s11 }
 0x5a9   :  { %v681_v33 = vpop.permute.xlu0 %680 }
 0x5ab   :  { %v740_v28 = vpop.xlane.xlu2 %739 }
 0x5ac   :  { %847 = vlog2.f32 %v740_v28 }
 0x5b2   :  { %v848_v29 = vpop.eup %847 }
 0x5b3   :  { %v742_v30 = vmul.f32 0.6931472, %v848_v29  ;;  %v616_v31 = vpop.permute.xlu2 %615 }
 0x5b4   :  { %619 = vst.msk [vmem:[%s1340_s9] sm:$0xff] %vm618_vm9, %v616_v31 }
 0x5b5   :  { %v743_v32 = vsub.f32 %v735_v13, %v742_v30  ;;  %684 = vst.msk [vmem:[%s1340_s9] sm:$0xff] %vm683_vm10, %v681_v33 }
 0x5b7   :  { %745 = vrot.lane.b32.xlu0 %v743_v32, %s1015_s10 }
 0x629   :  { %v746_v35 = vpop.permute.xlu0 %745 }
 0x62a   :  { %749 = vst.msk [vmem:[%s1340_s9] sm:$0xff] %vm748_vm11, %v746_v35 }
 0x62b   :  { %999 = dma.done.wait [#allocation4], 128  }
 0x62c   :  { %1000 = vsyncadd [#allocation4], 4294967168 }
 0x62d   :  { %770 = vsyncpa [#allocation3], 1 }
 0x62e   :  { %771 = vsyncpa [#allocation6], 1 }
 0x62f   :  { %772 = vsyncpa [#allocation9], 1 }
 0x630   :  { %773 = vsyncpa [#allocation4], 1 }

</bundles_post_ra>
